<compile_context>
chip_gen: v5e
topology: v5e:2x2
jax: 0.10.0
libtpu: 0.0.40
codegen_flags: <defaults>
</compile_context>

<pallas_src>
import jax
import jax.numpy as jnp
from jax.experimental import pallas as pl
from jax.experimental.pallas import tpu as pltpu


DATA_DIMS = 128
LATENT_DIMS = 16
ENC_HIDDEN = [64, 32, 16]
DEC_HIDDEN = [16, 32, 64]          # reversed(hidden_dims)

# MACs per batch row.
_MACS_PER_ROW = (DATA_DIMS * 64 + 64 * 32 + 32 * 16          # encoder hiddens
                 + 16 * LATENT_DIMS * 2                       # mu / logstd heads
                 + LATENT_DIMS * 16 + 16 * 32 + 32 * 64       # decoder hiddens
                 + 64 * DATA_DIMS)                            # dec_mu

_ALIGN = 16  # sublane alignment covering both f32 (8) and bf16 (16) packing


def _round_up(n, m):
    return ((n + m - 1) // m) * m


def _vae_kernel(
    x_ref,
    ew0, eb0, ew1, eb1, ew2, eb2,      # encoder hidden linears (bf16 W, f32 b)
    mw, mb, lw, lb,                    # enc_mean / enc_logstd heads
    eps_ref,                           # reparameterization noise
    dw0, db0, dw1, db1, dw2, db2,      # decoder hidden linears
    dmw, dmb,                          # dec_mu
    out_ref,
):
    f32 = jnp.float32
    bf16 = jnp.bfloat16

    def linear(h, w_ref, b_ref):
        # bf16 MXU operands, f32 accumulation; bias-add stays f32 (VPU).
        return (jnp.dot(h.astype(bf16), w_ref[...], preferred_element_type=f32)
                + b_ref[...])

    def linear_relu(h, w_ref, b_ref):
        return jnp.maximum(linear(h, w_ref, b_ref), 0.0)

    # ----- encoder -----
    z = x_ref[...]
    z = linear_relu(z, ew0, eb0)
    z = linear_relu(z, ew1, eb1)
    z = linear_relu(z, ew2, eb2)

    # Two separate lane-aligned heads (no cross-lane slice of a fused head).
    mu = linear(z, mw, mb)
    sigma = jnp.exp(linear(z, lw, lb))       # exp in f32 (EUP)

    # ----- reparameterization sample -----
    lat = mu + sigma * eps_ref[...].astype(f32)

    # ----- decoder -----
    h = linear_relu(lat, dw0, db0)
    h = linear_relu(h, dw1, db1)
    h = linear_relu(h, dw2, db2)
    out_ref[...] = linear(h, dmw, dmb).astype(out_ref.dtype)


def make_params(key):
    """Deterministic parameter init (shapes match the PyTorch module)."""
    def lin(key, fan_in, fan_out):
        kw, kb = jax.random.split(key)
        # PyTorch default init: U(-1/sqrt(fan_in), 1/sqrt(fan_in))
        bound = 1.0 / jnp.sqrt(jnp.float32(fan_in))
        w = jax.random.uniform(kw, (fan_in, fan_out), jnp.float32, -bound, bound)
        b = jax.random.uniform(kb, (1, fan_out), jnp.float32, -bound, bound)
        return w, b

    keys = jax.random.split(key, 9)
    enc_params = []
    dims = [DATA_DIMS] + ENC_HIDDEN
    for i in range(3):
        enc_params += list(lin(keys[i], dims[i], dims[i + 1]))
    enc_params += list(lin(keys[3], ENC_HIDDEN[-1], LATENT_DIMS))   # enc_mean
    # enc_logstd has a bias since disable_logstd_bias=False in the module.
    enc_params += list(lin(keys[4], ENC_HIDDEN[-1], LATENT_DIMS))   # enc_logstd

    dec_params = []
    ddims = [LATENT_DIMS] + DEC_HIDDEN
    for i in range(3):
        dec_params += list(lin(keys[5 + i], ddims[i], ddims[i + 1]))
    dec_params += list(lin(keys[8], DEC_HIDDEN[-1], DATA_DIMS))     # dec_mu
    return enc_params, dec_params


def vae_forward(x, enc_params, dec_params, eps, *, tile_b=4096,
                io_dtype=jnp.bfloat16):
    B = x.shape[0]
    assert x.shape == (B, DATA_DIMS) and eps.shape == (B, LATENT_DIMS)
    bf16 = jnp.bfloat16

    def cast_params(params):
        # params alternate (weight, bias): weights -> bf16 MXU operands,
        # biases stay f32 for the f32 bias-add.
        return [p.astype(bf16) if i % 2 == 0 else p.astype(jnp.float32)
                for i, p in enumerate(params)]

    enc_w = cast_params(list(enc_params))
    dec_w = cast_params(list(dec_params))

    x = x.astype(io_dtype)
    eps = eps.astype(io_dtype)

    # Batch tile: multiple of 16 (covers f32/bf16 sublane packing).  Capped at
    # ceil(B/2) so v7x megacore ("parallel" axis) gets >=2 tiles when B is big
    # enough.  No host-side padding: Pallas pads the ragged last block on read
    # and masks its writeback; padded rows are row-independent garbage.
    half = _round_up(pl.cdiv(B, 2), _ALIGN)
    tb = max(_ALIGN, min(_round_up(tile_b, _ALIGN), half))
    n_tiles = pl.cdiv(B, tb)

    def const_spec(a):
        # Same block every grid step -> DMA'd once, stays VMEM-resident.
        return pl.BlockSpec(a.shape, lambda i: (0, 0))

    in_specs = (
        [pl.BlockSpec((tb, DATA_DIMS), lambda i: (i, 0))]       # x tile
        + [const_spec(w) for w in enc_w]
        + [pl.BlockSpec((tb, LATENT_DIMS), lambda i: (i, 0))]   # eps tile
        + [const_spec(w) for w in dec_w]
    )
    out_spec = pl.BlockSpec((tb, DATA_DIMS), lambda i: (i, 0))

    io_bytes = jnp.dtype(io_dtype).itemsize
    param_bytes = sum(int(w.size) * w.dtype.itemsize for w in enc_w + dec_w)
    cost = pl.CostEstimate(
        flops=int(2 * B * _MACS_PER_ROW),
        transcendentals=int(B * LATENT_DIMS),
        bytes_accessed=int(B * (2 * DATA_DIMS + LATENT_DIMS) * io_bytes
                           + param_bytes),
    )

    # Raise the scoped-VMEM limit so large batch tiles fit; 3/4 of physical
    # leaves headroom on v7x (64 MiB), capped at 96 MiB on v5e/v6e (128 MiB).
    try:
        vmem_cap = pltpu.get_tpu_info().vmem_capacity_bytes
    except Exception:
        vmem_cap = 128 * 1024 * 1024
    vmem_limit = min((3 * vmem_cap) // 4, 96 * 1024 * 1024)

    out = pl.pallas_call(
        _vae_kernel,
        out_shape=jax.ShapeDtypeStruct((B, DATA_DIMS), io_dtype),
        grid=(n_tiles,),
        in_specs=in_specs,
        out_specs=out_spec,
        compiler_params=pltpu.CompilerParams(
            dimension_semantics=("parallel",),   # megacore sharding on v7x
            vmem_limit_bytes=int(vmem_limit)),
        cost_estimate=cost,
    )(x, *enc_w, eps, *dec_w)
    return out


def _reference(x, enc_params, dec_params, eps):
    """Pure-JAX reference with the same bf16-operand / f32-accumulate numerics."""
    bf16, f32 = jnp.bfloat16, jnp.float32

    def lin(h, w, b):
        return jnp.dot(h.astype(bf16), w.astype(bf16),
                       preferred_element_type=f32) + b

    ew0, eb0, ew1, eb1, ew2, eb2, mw, mb, lw, lb = enc_params
    dw0, db0, dw1, db1, dw2, db2, dmw, dmb = dec_params

    z = x
    for w, b in [(ew0, eb0), (ew1, eb1), (ew2, eb2)]:
        z = jax.nn.relu(lin(z, w, b))
    mu = lin(z, mw, mb)
    sigma = jnp.exp(lin(z, lw, lb))
    lat = mu + sigma * eps.astype(bf16).astype(f32)
    h = lat
    for w, b in [(dw0, db0), (dw1, db1), (dw2, db2)]:
        h = jax.nn.relu(lin(h, w, b))
    return lin(h, dmw, dmb)


if __name__ == "__main__":
    key = jax.random.PRNGKey(0)
    k_param, k_x, k_eps = jax.random.split(key, 3)

    B = 2
    x = jax.random.normal(k_x, (B, DATA_DIMS), jnp.float32)
    eps = jax.random.normal(k_eps, (B, LATENT_DIMS), jnp.float32)

    enc_params, dec_params = make_params(k_param)

    out = vae_forward(x, enc_params, dec_params, eps)
    out = jax.block_until_ready(out)
    assert out.shape == (B, DATA_DIMS)

    ref = _reference(x, enc_params, dec_params, eps)
    assert jnp.allclose(out.astype(jnp.float32), ref, atol=3e-2, rtol=3e-2), \
        "mismatch vs JAX reference"

    print("KERNEL_OK")
</pallas_src>

<mosaic_0001>
module attributes {stable_mosaic.version = 11 : i64} {
  func.func @_vae_kernel(%arg0: i32, %arg1: memref<16x128xbf16, #tpu.memory_space<vmem>>, %arg2: memref<128x64xbf16, #tpu.memory_space<vmem>>, %arg3: memref<1x64xf32, #tpu.memory_space<vmem>>, %arg4: memref<64x32xbf16, #tpu.memory_space<vmem>>, %arg5: memref<1x32xf32, #tpu.memory_space<vmem>>, %arg6: memref<32x16xbf16, #tpu.memory_space<vmem>>, %arg7: memref<1x16xf32, #tpu.memory_space<vmem>>, %arg8: memref<16x16xbf16, #tpu.memory_space<vmem>>, %arg9: memref<1x16xf32, #tpu.memory_space<vmem>>, %arg10: memref<16x16xbf16, #tpu.memory_space<vmem>>, %arg11: memref<1x16xf32, #tpu.memory_space<vmem>>, %arg12: memref<16x16xbf16, #tpu.memory_space<vmem>>, %arg13: memref<16x16xbf16, #tpu.memory_space<vmem>>, %arg14: memref<1x16xf32, #tpu.memory_space<vmem>>, %arg15: memref<16x32xbf16, #tpu.memory_space<vmem>>, %arg16: memref<1x32xf32, #tpu.memory_space<vmem>>, %arg17: memref<32x64xbf16, #tpu.memory_space<vmem>>, %arg18: memref<1x64xf32, #tpu.memory_space<vmem>>, %arg19: memref<64x128xbf16, #tpu.memory_space<vmem>>, %arg20: memref<1x128xf32, #tpu.memory_space<vmem>>, %arg21: memref<16x128xbf16, #tpu.memory_space<vmem>>) attributes {dimension_semantics = [#tpu.dimension_semantics<parallel>], iteration_bounds = array<i64: 1>, scalar_prefetch = 0 : i64, scratch_operands = 0 : i64, tpu.core_type = #tpu.core_type<tc>, window_params = [{transform_indices = @transform_0, window_bounds = array<i64: 16, 128>}, {pipeline_mode = #tpu.pipeline_mode<synchronous>, transform_indices = @transform_1, window_bounds = array<i64: 128, 64>}, {pipeline_mode = #tpu.pipeline_mode<synchronous>, transform_indices = @transform_2, window_bounds = array<i64: 1, 64>}, {pipeline_mode = #tpu.pipeline_mode<synchronous>, transform_indices = @transform_3, window_bounds = array<i64: 64, 32>}, {pipeline_mode = #tpu.pipeline_mode<synchronous>, transform_indices = @transform_4, window_bounds = array<i64: 1, 32>}, {pipeline_mode = #tpu.pipeline_mode<synchronous>, transform_indices = @transform_5, window_bounds = array<i64: 32, 16>}, {pipeline_mode = #tpu.pipeline_mode<synchronous>, transform_indices = @transform_6, window_bounds = array<i64: 1, 16>}, {pipeline_mode = #tpu.pipeline_mode<synchronous>, transform_indices = @transform_7, window_bounds = array<i64: 16, 16>}, {pipeline_mode = #tpu.pipeline_mode<synchronous>, transform_indices = @transform_8, window_bounds = array<i64: 1, 16>}, {pipeline_mode = #tpu.pipeline_mode<synchronous>, transform_indices = @transform_9, window_bounds = array<i64: 16, 16>}, {pipeline_mode = #tpu.pipeline_mode<synchronous>, transform_indices = @transform_10, window_bounds = array<i64: 1, 16>}, {transform_indices = @transform_11, window_bounds = array<i64: 16, 16>}, {pipeline_mode = #tpu.pipeline_mode<synchronous>, transform_indices = @transform_12, window_bounds = array<i64: 16, 16>}, {pipeline_mode = #tpu.pipeline_mode<synchronous>, transform_indices = @transform_13, window_bounds = array<i64: 1, 16>}, {pipeline_mode = #tpu.pipeline_mode<synchronous>, transform_indices = @transform_14, window_bounds = array<i64: 16, 32>}, {pipeline_mode = #tpu.pipeline_mode<synchronous>, transform_indices = @transform_15, window_bounds = array<i64: 1, 32>}, {pipeline_mode = #tpu.pipeline_mode<synchronous>, transform_indices = @transform_16, window_bounds = array<i64: 32, 64>}, {pipeline_mode = #tpu.pipeline_mode<synchronous>, transform_indices = @transform_17, window_bounds = array<i64: 1, 64>}, {pipeline_mode = #tpu.pipeline_mode<synchronous>, transform_indices = @transform_18, window_bounds = array<i64: 64, 128>}, {pipeline_mode = #tpu.pipeline_mode<synchronous>, transform_indices = @transform_19, window_bounds = array<i64: 1, 128>}, {transform_indices = @transform_20, window_bounds = array<i64: 16, 128>}]} {
    %c0 = arith.constant 0 : index
    %c0_0 = arith.constant 0 : index
    %0 = vector.load %arg1[%c0, %c0_0] : memref<16x128xbf16, #tpu.memory_space<vmem>>, vector<16x128xbf16>
    %c0_1 = arith.constant 0 : index
    %c0_2 = arith.constant 0 : index
    %1 = vector.load %arg2[%c0_1, %c0_2] : memref<128x64xbf16, #tpu.memory_space<vmem>>, vector<128x64xbf16>
    %cst = arith.constant dense<0.000000e+00> : vector<16x64xf32>
    %2 = tpu.matmul %0, %1, %cst {dimension_numbers = #tpu.dot_dimension_numbers<[1], [0], [0], [1], [0, 0, 1, 1], [], []>} : vector<16x128xbf16>, vector<128x64xbf16>, vector<16x64xf32> -> vector<16x64xf32>
    %c0_3 = arith.constant 0 : index
    %c0_4 = arith.constant 0 : index
    %3 = vector.load %arg3[%c0_3, %c0_4] : memref<1x64xf32, #tpu.memory_space<vmem>>, vector<1x64xf32>
    %4 = vector.broadcast %3 : vector<1x64xf32> to vector<16x64xf32>
    %5 = arith.addf %2, %4 : vector<16x64xf32>
    %cst_5 = arith.constant 0.000000e+00 : f32
    %6 = vector.broadcast %cst_5 : f32 to vector<16x64xf32>
    %7 = arith.maximumf %5, %6 : vector<16x64xf32>
    %8 = arith.truncf %7 : vector<16x64xf32> to vector<16x64xbf16>
    %c0_6 = arith.constant 0 : index
    %c0_7 = arith.constant 0 : index
    %9 = vector.load %arg4[%c0_6, %c0_7] : memref<64x32xbf16, #tpu.memory_space<vmem>>, vector<64x32xbf16>
    %cst_8 = arith.constant dense<0.000000e+00> : vector<16x32xf32>
    %10 = tpu.matmul %8, %9, %cst_8 {dimension_numbers = #tpu.dot_dimension_numbers<[1], [0], [0], [1], [0, 0, 1, 1], [], []>} : vector<16x64xbf16>, vector<64x32xbf16>, vector<16x32xf32> -> vector<16x32xf32>
    %c0_9 = arith.constant 0 : index
    %c0_10 = arith.constant 0 : index
    %11 = vector.load %arg5[%c0_9, %c0_10] : memref<1x32xf32, #tpu.memory_space<vmem>>, vector<1x32xf32>
    %12 = vector.broadcast %11 : vector<1x32xf32> to vector<16x32xf32>
    %13 = arith.addf %10, %12 : vector<16x32xf32>
    %cst_11 = arith.constant 0.000000e+00 : f32
    %14 = vector.broadcast %cst_11 : f32 to vector<16x32xf32>
    %15 = arith.maximumf %13, %14 : vector<16x32xf32>
    %16 = arith.truncf %15 : vector<16x32xf32> to vector<16x32xbf16>
    %c0_12 = arith.constant 0 : index
    %c0_13 = arith.constant 0 : index
    %17 = vector.load %arg6[%c0_12, %c0_13] : memref<32x16xbf16, #tpu.memory_space<vmem>>, vector<32x16xbf16>
    %cst_14 = arith.constant dense<0.000000e+00> : vector<16x16xf32>
    %18 = tpu.matmul %16, %17, %cst_14 {dimension_numbers = #tpu.dot_dimension_numbers<[1], [0], [0], [1], [0, 0, 1, 1], [], []>} : vector<16x32xbf16>, vector<32x16xbf16>, vector<16x16xf32> -> vector<16x16xf32>
    %c0_15 = arith.constant 0 : index
    %c0_16 = arith.constant 0 : index
    %19 = vector.load %arg7[%c0_15, %c0_16] : memref<1x16xf32, #tpu.memory_space<vmem>>, vector<1x16xf32>
    %20 = vector.broadcast %19 : vector<1x16xf32> to vector<16x16xf32>
    %21 = arith.addf %18, %20 : vector<16x16xf32>
    %cst_17 = arith.constant 0.000000e+00 : f32
    %22 = vector.broadcast %cst_17 : f32 to vector<16x16xf32>
    %23 = arith.maximumf %21, %22 : vector<16x16xf32>
    %24 = arith.truncf %23 : vector<16x16xf32> to vector<16x16xbf16>
    %c0_18 = arith.constant 0 : index
    %c0_19 = arith.constant 0 : index
    %25 = vector.load %arg8[%c0_18, %c0_19] : memref<16x16xbf16, #tpu.memory_space<vmem>>, vector<16x16xbf16>
    %cst_20 = arith.constant dense<0.000000e+00> : vector<16x16xf32>
    %26 = tpu.matmul %24, %25, %cst_20 {dimension_numbers = #tpu.dot_dimension_numbers<[1], [0], [0], [1], [0, 0, 1, 1], [], []>} : vector<16x16xbf16>, vector<16x16xbf16>, vector<16x16xf32> -> vector<16x16xf32>
    %c0_21 = arith.constant 0 : index
    %c0_22 = arith.constant 0 : index
    %27 = vector.load %arg9[%c0_21, %c0_22] : memref<1x16xf32, #tpu.memory_space<vmem>>, vector<1x16xf32>
    %28 = vector.broadcast %27 : vector<1x16xf32> to vector<16x16xf32>
    %29 = arith.addf %26, %28 : vector<16x16xf32>
    %30 = arith.truncf %23 : vector<16x16xf32> to vector<16x16xbf16>
    %c0_23 = arith.constant 0 : index
    %c0_24 = arith.constant 0 : index
    %31 = vector.load %arg10[%c0_23, %c0_24] : memref<16x16xbf16, #tpu.memory_space<vmem>>, vector<16x16xbf16>
    %cst_25 = arith.constant dense<0.000000e+00> : vector<16x16xf32>
    %32 = tpu.matmul %30, %31, %cst_25 {dimension_numbers = #tpu.dot_dimension_numbers<[1], [0], [0], [1], [0, 0, 1, 1], [], []>} : vector<16x16xbf16>, vector<16x16xbf16>, vector<16x16xf32> -> vector<16x16xf32>
    %c0_26 = arith.constant 0 : index
    %c0_27 = arith.constant 0 : index
    %33 = vector.load %arg11[%c0_26, %c0_27] : memref<1x16xf32, #tpu.memory_space<vmem>>, vector<1x16xf32>
    %34 = vector.broadcast %33 : vector<1x16xf32> to vector<16x16xf32>
    %35 = arith.addf %32, %34 : vector<16x16xf32>
    %36 = math.exp %35 : vector<16x16xf32>
    %c0_28 = arith.constant 0 : index
    %c0_29 = arith.constant 0 : index
    %37 = vector.load %arg12[%c0_28, %c0_29] : memref<16x16xbf16, #tpu.memory_space<vmem>>, vector<16x16xbf16>
    %38 = arith.extf %37 : vector<16x16xbf16> to vector<16x16xf32>
    %39 = arith.mulf %36, %38 : vector<16x16xf32>
    %40 = arith.addf %29, %39 : vector<16x16xf32>
    %41 = arith.truncf %40 : vector<16x16xf32> to vector<16x16xbf16>
    %c0_30 = arith.constant 0 : index
    %c0_31 = arith.constant 0 : index
    %42 = vector.load %arg13[%c0_30, %c0_31] : memref<16x16xbf16, #tpu.memory_space<vmem>>, vector<16x16xbf16>
    %cst_32 = arith.constant dense<0.000000e+00> : vector<16x16xf32>
    %43 = tpu.matmul %41, %42, %cst_32 {dimension_numbers = #tpu.dot_dimension_numbers<[1], [0], [0], [1], [0, 0, 1, 1], [], []>} : vector<16x16xbf16>, vector<16x16xbf16>, vector<16x16xf32> -> vector<16x16xf32>
    %c0_33 = arith.constant 0 : index
    %c0_34 = arith.constant 0 : index
    %44 = vector.load %arg14[%c0_33, %c0_34] : memref<1x16xf32, #tpu.memory_space<vmem>>, vector<1x16xf32>
    %45 = vector.broadcast %44 : vector<1x16xf32> to vector<16x16xf32>
    %46 = arith.addf %43, %45 : vector<16x16xf32>
    %cst_35 = arith.constant 0.000000e+00 : f32
    %47 = vector.broadcast %cst_35 : f32 to vector<16x16xf32>
    %48 = arith.maximumf %46, %47 : vector<16x16xf32>
    %49 = arith.truncf %48 : vector<16x16xf32> to vector<16x16xbf16>
    %c0_36 = arith.constant 0 : index
    %c0_37 = arith.constant 0 : index
    %50 = vector.load %arg15[%c0_36, %c0_37] : memref<16x32xbf16, #tpu.memory_space<vmem>>, vector<16x32xbf16>
    %cst_38 = arith.constant dense<0.000000e+00> : vector<16x32xf32>
    %51 = tpu.matmul %49, %50, %cst_38 {dimension_numbers = #tpu.dot_dimension_numbers<[1], [0], [0], [1], [0, 0, 1, 1], [], []>} : vector<16x16xbf16>, vector<16x32xbf16>, vector<16x32xf32> -> vector<16x32xf32>
    %c0_39 = arith.constant 0 : index
    %c0_40 = arith.constant 0 : index
    %52 = vector.load %arg16[%c0_39, %c0_40] : memref<1x32xf32, #tpu.memory_space<vmem>>, vector<1x32xf32>
    %53 = vector.broadcast %52 : vector<1x32xf32> to vector<16x32xf32>
    %54 = arith.addf %51, %53 : vector<16x32xf32>
    %cst_41 = arith.constant 0.000000e+00 : f32
    %55 = vector.broadcast %cst_41 : f32 to vector<16x32xf32>
    %56 = arith.maximumf %54, %55 : vector<16x32xf32>
    %57 = arith.truncf %56 : vector<16x32xf32> to vector<16x32xbf16>
    %c0_42 = arith.constant 0 : index
    %c0_43 = arith.constant 0 : index
    %58 = vector.load %arg17[%c0_42, %c0_43] : memref<32x64xbf16, #tpu.memory_space<vmem>>, vector<32x64xbf16>
    %cst_44 = arith.constant dense<0.000000e+00> : vector<16x64xf32>
    %59 = tpu.matmul %57, %58, %cst_44 {dimension_numbers = #tpu.dot_dimension_numbers<[1], [0], [0], [1], [0, 0, 1, 1], [], []>} : vector<16x32xbf16>, vector<32x64xbf16>, vector<16x64xf32> -> vector<16x64xf32>
    %c0_45 = arith.constant 0 : index
    %c0_46 = arith.constant 0 : index
    %60 = vector.load %arg18[%c0_45, %c0_46] : memref<1x64xf32, #tpu.memory_space<vmem>>, vector<1x64xf32>
    %61 = vector.broadcast %60 : vector<1x64xf32> to vector<16x64xf32>
    %62 = arith.addf %59, %61 : vector<16x64xf32>
    %cst_47 = arith.constant 0.000000e+00 : f32
    %63 = vector.broadcast %cst_47 : f32 to vector<16x64xf32>
    %64 = arith.maximumf %62, %63 : vector<16x64xf32>
    %65 = arith.truncf %64 : vector<16x64xf32> to vector<16x64xbf16>
    %c0_48 = arith.constant 0 : index
    %c0_49 = arith.constant 0 : index
    %66 = vector.load %arg19[%c0_48, %c0_49] : memref<64x128xbf16, #tpu.memory_space<vmem>>, vector<64x128xbf16>
    %cst_50 = arith.constant dense<0.000000e+00> : vector<16x128xf32>
    %67 = tpu.matmul %65, %66, %cst_50 {dimension_numbers = #tpu.dot_dimension_numbers<[1], [0], [0], [1], [0, 0, 1, 1], [], []>} : vector<16x64xbf16>, vector<64x128xbf16>, vector<16x128xf32> -> vector<16x128xf32>
    %c0_51 = arith.constant 0 : index
    %c0_52 = arith.constant 0 : index
    %68 = vector.load %arg20[%c0_51, %c0_52] : memref<1x128xf32, #tpu.memory_space<vmem>>, vector<1x128xf32>
    %69 = vector.broadcast %68 : vector<1x128xf32> to vector<16x128xf32>
    %70 = arith.addf %67, %69 : vector<16x128xf32>
    %71 = arith.truncf %70 : vector<16x128xf32> to vector<16x128xbf16>
    %c0_53 = arith.constant 0 : index
    %c0_54 = arith.constant 0 : index
    %72 = vector.load %arg21[%c0_53, %c0_54] : memref<16x128xbf16, #tpu.memory_space<vmem>>, vector<16x128xbf16>
    tpu.vector_store %arg21[%c0_53, %c0_54], %71 {strides = array<i32>} : memref<16x128xbf16, #tpu.memory_space<vmem>>, vector<16x128xbf16>,
    return
  }
  func.func @transform_0(%arg0: i32) -> (i32, i32) {
    %c0_i32 = arith.constant 0 : i32
    %c0_i32_0 = arith.constant 0 : i32
    return %arg0, %c0_i32 : i32, i32
  }
  func.func @transform_1(%arg0: i32) -> (i32, i32) {
    %c0_i32 = arith.constant 0 : i32
    %c0_i32_0 = arith.constant 0 : i32
    %c0_i32_1 = arith.constant 0 : i32
    return %c0_i32, %c0_i32_0 : i32, i32
  }
  func.func @transform_2(%arg0: i32) -> (i32, i32) {
    %c0_i32 = arith.constant 0 : i32
    %c0_i32_0 = arith.constant 0 : i32
    %c0_i32_1 = arith.constant 0 : i32
    return %c0_i32, %c0_i32_0 : i32, i32
  }
  func.func @transform_3(%arg0: i32) -> (i32, i32) {
    %c0_i32 = arith.constant 0 : i32
    %c0_i32_0 = arith.constant 0 : i32
    %c0_i32_1 = arith.constant 0 : i32
    return %c0_i32, %c0_i32_0 : i32, i32
  }
  func.func @transform_4(%arg0: i32) -> (i32, i32) {
    %c0_i32 = arith.constant 0 : i32
    %c0_i32_0 = arith.constant 0 : i32
    %c0_i32_1 = arith.constant 0 : i32
    return %c0_i32, %c0_i32_0 : i32, i32
  }
  func.func @transform_5(%arg0: i32) -> (i32, i32) {
    %c0_i32 = arith.constant 0 : i32
    %c0_i32_0 = arith.constant 0 : i32
    %c0_i32_1 = arith.constant 0 : i32
    return %c0_i32, %c0_i32_0 : i32, i32
  }
  func.func @transform_6(%arg0: i32) -> (i32, i32) {
    %c0_i32 = arith.constant 0 : i32
    %c0_i32_0 = arith.constant 0 : i32
    %c0_i32_1 = arith.constant 0 : i32
    return %c0_i32, %c0_i32_0 : i32, i32
  }
  func.func @transform_7(%arg0: i32) -> (i32, i32) {
    %c0_i32 = arith.constant 0 : i32
    %c0_i32_0 = arith.constant 0 : i32
    %c0_i32_1 = arith.constant 0 : i32
    return %c0_i32, %c0_i32_0 : i32, i32
  }
  func.func @transform_8(%arg0: i32) -> (i32, i32) {
    %c0_i32 = arith.constant 0 : i32
    %c0_i32_0 = arith.constant 0 : i32
    %c0_i32_1 = arith.constant 0 : i32
    return %c0_i32, %c0_i32_0 : i32, i32
  }
  func.func @transform_9(%arg0: i32) -> (i32, i32) {
    %c0_i32 = arith.constant 0 : i32
    %c0_i32_0 = arith.constant 0 : i32
    %c0_i32_1 = arith.constant 0 : i32
    return %c0_i32, %c0_i32_0 : i32, i32
  }
  func.func @transform_10(%arg0: i32) -> (i32, i32) {
    %c0_i32 = arith.constant 0 : i32
    %c0_i32_0 = arith.constant 0 : i32
    %c0_i32_1 = arith.constant 0 : i32
    return %c0_i32, %c0_i32_0 : i32, i32
  }
  func.func @transform_11(%arg0: i32) -> (i32, i32) {
    %c0_i32 = arith.constant 0 : i32
    %c0_i32_0 = arith.constant 0 : i32
    return %arg0, %c0_i32 : i32, i32
  }
  func.func @transform_12(%arg0: i32) -> (i32, i32) {
    %c0_i32 = arith.constant 0 : i32
    %c0_i32_0 = arith.constant 0 : i32
    %c0_i32_1 = arith.constant 0 : i32
    return %c0_i32, %c0_i32_0 : i32, i32
  }
  func.func @transform_13(%arg0: i32) -> (i32, i32) {
    %c0_i32 = arith.constant 0 : i32
    %c0_i32_0 = arith.constant 0 : i32
    %c0_i32_1 = arith.constant 0 : i32
    return %c0_i32, %c0_i32_0 : i32, i32
  }
  func.func @transform_14(%arg0: i32) -> (i32, i32) {
    %c0_i32 = arith.constant 0 : i32
    %c0_i32_0 = arith.constant 0 : i32
    %c0_i32_1 = arith.constant 0 : i32
    return %c0_i32, %c0_i32_0 : i32, i32
  }
  func.func @transform_15(%arg0: i32) -> (i32, i32) {
    %c0_i32 = arith.constant 0 : i32
    %c0_i32_0 = arith.constant 0 : i32
    %c0_i32_1 = arith.constant 0 : i32
    return %c0_i32, %c0_i32_0 : i32, i32
  }
  func.func @transform_16(%arg0: i32) -> (i32, i32) {
    %c0_i32 = arith.constant 0 : i32
    %c0_i32_0 = arith.constant 0 : i32
    %c0_i32_1 = arith.constant 0 : i32
    return %c0_i32, %c0_i32_0 : i32, i32
  }
  func.func @transform_17(%arg0: i32) -> (i32, i32) {
    %c0_i32 = arith.constant 0 : i32
    %c0_i32_0 = arith.constant 0 : i32
    %c0_i32_1 = arith.constant 0 : i32
    return %c0_i32, %c0_i32_0 : i32, i32
  }
  func.func @transform_18(%arg0: i32) -> (i32, i32) {
    %c0_i32 = arith.constant 0 : i32
    %c0_i32_0 = arith.constant 0 : i32
    %c0_i32_1 = arith.constant 0 : i32
    return %c0_i32, %c0_i32_0 : i32, i32
  }
  func.func @transform_19(%arg0: i32) -> (i32, i32) {
    %c0_i32 = arith.constant 0 : i32
    %c0_i32_0 = arith.constant 0 : i32
    %c0_i32_1 = arith.constant 0 : i32
    return %c0_i32, %c0_i32_0 : i32, i32
  }
  func.func @transform_20(%arg0: i32) -> (i32, i32) {
    %c0_i32 = arith.constant 0 : i32
    %c0_i32_0 = arith.constant 0 : i32
    return %arg0, %c0_i32 : i32, i32
  }
}

</mosaic_0001>

<bundles_post_ra>
// kernel: tpu_custom_call.1
= control target key start
LH: loop header
LB: loop body
LE: loop exit
PB: predicated region body
PF: predicated region fallthrough
CT: control target
= control target key end

     0   :  { %s1060_s0 = inlined_call_operand.vmem [shape: bf16[2,128], index: 0, kind: input, shape index: {}]   ;;  %s1061_s1 = inlined_call_operand.vmem [shape: bf16[128,64], index: 1, kind: input, shape index: {}]   ;;  %s1062_s2 = inlined_call_operand.vmem [shape: f32[1,64], index: 2, kind: input, shape index: {}]   ;;  %s1063_s3 = inlined_call_operand.vmem [shape: bf16[64,32], index: 3, kind: input, shape index: {}]   ;;  %s1064_s4 = inlined_call_operand.vmem [shape: f32[1,32], index: 4, kind: input, shape index: {}]   ;;  %s1065_s5 = inlined_call_operand.vmem [shape: bf16[32,16], index: 5, kind: input, shape index: {}]   ;;  %s1066_s6 = inlined_call_operand.vmem [shape: f32[1,16], index: 6, kind: input, shape index: {}]   ;;  %s1067_s7 = inlined_call_operand.vmem [shape: bf16[16,16], index: 7, kind: input, shape index: {}]   ;;  %s1068_s8 = inlined_call_operand.vmem [shape: f32[1,16], index: 8, kind: input, shape index: {}]   ;;  %s1069_s9 = inlined_call_operand.vmem [shape: bf16[16,16], index: 9, kind: input, shape index: {}]   ;;  %s1070_s10 = inlined_call_operand.vmem [shape: f32[1,16], index: 10, kind: input, shape index: {}]   ;;  %s1071_s11 = inlined_call_operand.vmem [shape: bf16[2,16], index: 11, kind: input, shape index: {}]   ;;  %s1072_s12 = inlined_call_operand.vmem [shape: bf16[16,16], index: 12, kind: input, shape index: {}]   ;;  %s1073_s13 = inlined_call_operand.vmem [shape: f32[1,16], index: 13, kind: input, shape index: {}]   ;;  %s1074_s14 = inlined_call_operand.vmem [shape: bf16[16,32], index: 14, kind: input, shape index: {}]   ;;  %s1075_s15 = inlined_call_operand.vmem [shape: f32[1,32], index: 15, kind: input, shape index: {}]   ;;  %s1076_s16 = inlined_call_operand.vmem [shape: bf16[32,64], index: 16, kind: input, shape index: {}]   ;;  %s1077_s17 = inlined_call_operand.vmem [shape: f32[1,64], index: 17, kind: input, shape index: {}]   ;;  %s1078_s18 = inlined_call_operand.vmem [shape: bf16[64,128], index: 18, kind: input, shape index: {}]   ;;  %s1079_s19 = inlined_call_operand.vmem [shape: f32[1,128], index: 19, kind: input, shape index: {}]   ;;  %s1080_s20 = inlined_call_operand.hbm [shape: bf16[2,128], index: 20, kind: output, shape index: {}]  }
   0x1   :  { %1084 = sst [smem:[#allocation5_spill]] %s1060_s0 }
   0x2   :  { %1085 = sst [smem:[#allocation6_spill]] %s1061_s1 }
   0x3   :  { %1086 = sst [smem:[#allocation7_spill]] %s1062_s2 }
   0x4   :  { %1087 = sst [smem:[#allocation8_spill]] %s1063_s3 }
   0x5   :  { %1088 = sst [smem:[#allocation9_spill]] %s1064_s4 }
   0x6   :  { %25 = vsyncpa [#allocation3], 0  ;;  %s1089_s23 = sld [smem:[#allocation6_spill]]  ;;  %v343_v12 = vld [vmem:[%s1071_s11] sm:$0x1]  ;;  %vm221_vm0 = vcmask 523264  }
   0x7   :  { %s1090_s26 = sld [smem:[#allocation5_spill]]  ;;  %v344_v14 = vld [vmem:[%s1071_s11 + $0x1] sm:$0x1]  ;;  %v345_v15 = vld [vmem:[%s1071_s11 + $0x2] sm:$0x1]  ;;  %v351_v17 = vunpack.c.l.bf16 %v343_v12  ;;  %v733_v37 = vld [vmem:[%s1065_s5 + $0x8] sm:$0xff] }
   0x8   :  { %v346_v16 = vld [vmem:[%s1071_s11 + $0x3] sm:$0x1]  ;;  %v352_v18 = vunpack.c.l.bf16 %v344_v14  ;;  %v353_v20 = vunpack.c.l.bf16 %v345_v15  ;;  %s1091_s24 = sld [smem:[#allocation8_spill]]  ;;  %272 = vmatpush.bf16.msra.mxu2 %v733_v37  ;;  %vm262_vm1 = vcmask 261120   ;;  %v749_v50 = vld [vmem:[%s1066_s6] ss:$0 sm:$0xff] }
   0x9   :  { %v354_v22 = vunpack.c.l.bf16 %v346_v16  ;;  %s1092_s29 = sld [smem:[#allocation7_spill]]  ;;  %v732_v38 = vld [vmem:[%s1065_s5] sm:$0xff]  ;;  %vm295_vm2 = vcmask 130048   ;;  %vm554_vm3 = vcmask 1040384   ;;  %vm558_vm4 = vcmask 1041409  }
   0xa   :  { %s1093_s2 = sld [smem:[#allocation9_spill]]  ;;  %v734_v47 = vld [vmem:[%s1067_s7] sm:$0xff]  ;;  %vm562_vm5 = vcmask 1042434   ;;  %vm566_vm6 = vcmask 1043459  }
   0xb   :  { %306 = vmatpush.bf16.msra.mxu3 %v734_v47  ;;  %v735_v48 = vld [vmem:[%s1069_s9] sm:$0xff] }
   0xc   :  { %v727_v0 = vld [vmem:[%s1089_s23 + $0x38] sm:$0xff]  ;;  %v726_v1 = vld [vmem:[%s1089_s23 + $0x30] sm:$0xff]  ;;  %v725_v6 = vld [vmem:[%s1089_s23 + $0x28] sm:$0xff]  ;;  %273 = vmatpush.bf16.msra.mxu2 %v732_v38 }
   0xd   :  { %168 = vmatpush.bf16.msra.mxu0 %v727_v0  ;;  %v67_v2 = vld [vmem:[%s1090_s26] sm:$0x1]  ;;  %v68_v3 = vld [vmem:[%s1090_s26 + $0x1] sm:$0x1]  ;;  %v69_v4 = vld [vmem:[%s1090_s26 + $0x2] sm:$0x1] }
   0xe   :  { %v70_v5 = vld [vmem:[%s1090_s26 + $0x3] sm:$0x1]  ;;  %96 = vst [vmem:[#allocation1] ss:$9 sm:$0xff] %v67_v2  ;;  %v71_v7 = vld [vmem:[%s1090_s26 + $0x4] sm:$0x1] }
   0xf   :  { %99 = vst [vmem:[#allocation1 + $0x1] ss:$9 sm:$0xff] %v68_v3  ;;  %v72_v8 = vld [vmem:[%s1090_s26 + $0x5] sm:$0x1]  ;;  %v73_v9 = vld [vmem:[%s1090_s26 + $0x6] sm:$0x1]  ;;  %332 = vmatpush.bf16.msrb.mxu3 %v735_v48 }
  0x10   :  { %102 = vst [vmem:[#allocation1 + $0x2] ss:$9 sm:$0xff] %v69_v4  ;;  %v724_v10 = vld [vmem:[%s1089_s23 + $0x20] sm:$0xff]  ;;  %v723_v13 = vld [vmem:[%s1089_s23 + $0x18] sm:$0xff]  ;;  %v722_v19 = vld [vmem:[%s1089_s23 + $0x10] sm:$0xff] }
  0x11   :  { %169 = vmatpush.bf16.msra.mxu0 %v726_v1  ;;  %v74_v11 = vld [vmem:[%s1090_s26 + $0x7] sm:$0x1]  ;;  %105 = vst [vmem:[#allocation1 + $0x3] ss:$9 sm:$0xff] %v70_v5  ;;  %v721_v23 = vld [vmem:[%s1089_s23 + $0x8] sm:$0xff]  ;;  %v731_v25 = vld [vmem:[%s1091_s24 + $0x18] sm:$0xff] }
  0x12   :  { %108 = vst [vmem:[#allocation1 + $0x4] ss:$9 sm:$0xff] %v71_v7  ;;  %v720_v24 = vld [vmem:[%s1089_s23] sm:$0xff]  ;;  %229 = vmatpush.bf16.msra.mxu1 %v731_v25  ;;  %v730_v26 = vld [vmem:[%s1091_s24 + $0x10] sm:$0xff]  ;;  %v729_v27 = vld [vmem:[%s1091_s24 + $0x8] sm:$0xff] }
  0x13   :  { %111 = vst [vmem:[#allocation1 + $0x5] ss:$9 sm:$0xff] %v72_v8  ;;  %v728_v28 = vld [vmem:[%s1091_s24] sm:$0xff] }
  0x14   :  { %114 = vst [vmem:[#allocation1 + $0x6] ss:$9 sm:$0xff] %v73_v9  ;;  %v747_v30 = vld [vmem:[%s1092_s29] ss:$0 sm:$0xff]  ;;  %v347_v57 = vld [vmem:[%s1071_s11 + $0x4] sm:$0x1] }
  0x15   :  { %170 = vmatpush.bf16.msra.mxu0 %v725_v6  ;;  %117 = vst [vmem:[#allocation1 + $0x7] ss:$9 sm:$0xff] %v74_v11  ;;  %v748_v40 = vld [vmem:[%s1093_s2] ss:$0 sm:$0xff]  ;;  %v348_v58 = vld [vmem:[%s1071_s11 + $0x5] sm:$0x1]  ;;  %v355_v61 = vunpack.c.l.bf16 %v347_v57 }
  0x16   :  { %230 = vmatpush.bf16.msra.mxu1 %v730_v26  ;;  %v349_v59 = vld [vmem:[%s1071_s11 + $0x6] sm:$0x1]  ;;  %v350_v60 = vld [vmem:[%s1071_s11 + $0x7] sm:$0x1]  ;;  %v356_v62 = vunpack.c.l.bf16 %v348_v58  ;;  %v751_v5 = vld [vmem:[%s1070_s10] ss:$0 sm:$0xff] }
  0x17   :  { %v357_v63 = vunpack.c.l.bf16 %v349_v59  ;;  %v358_v0 = vunpack.c.l.bf16 %v350_v60  ;;  %375 = vst [vmem:[#allocation1 + $0x20] ss:$4 sm:$0xff] %v355_v61  ;;  %v736_v2 = vld [vmem:[%s1072_s12] sm:$0xff] }
  0x18   :  { %377 = vst [vmem:[#allocation1 + $0x21] ss:$4 sm:$0xff] %v356_v62  ;;  %413 = vmatpush.bf16.msrb.mxu2 %v736_v2  ;;  %v737_v4 = vld [vmem:[%s1074_s14] sm:$0xff] }
  0x19   :  { %171 = vmatpush.bf16.msra.mxu0 %v724_v10  ;;  %379 = vst [vmem:[#allocation1 + $0x22] ss:$4 sm:$0xff] %v357_v63  ;;  %v750_v14 = vld [vmem:[%s1068_s8] ss:$0 sm:$0xff] }
  0x1a   :  { %231 = vmatpush.bf16.msra.mxu1 %v729_v27  ;;  %381 = vst [vmem:[#allocation1 + $0x23] ss:$4 sm:$0xff] %v358_v0  ;;  %v752_v26 = vld [vmem:[%s1073_s13] ss:$0 sm:$0xff] }
  0x1b   :  { %v754_v47 = vld [vmem:[%s1077_s17] ss:$0 sm:$0xff] }
  0x1c   :  { %v118_v21 = vld [vmem:[#allocation1] sm:$0xff] }
  0x1d   :  { %172 = vmatpush.bf16.msra.mxu0 %v723_v13  ;;  %367 = vst [vmem:[#allocation1] ss:$4 sm:$0xff] %v351_v17 }
  0x1e   :  { %369 = vst [vmem:[#allocation1 + $0x1] ss:$4 sm:$0xff] %v352_v18  ;;  %232 = vmatpush.bf16.msra.mxu1 %v728_v28 }
  0x1f   :  { %371 = vst [vmem:[#allocation1 + $0x2] ss:$4 sm:$0xff] %v353_v20 }
  0x20   :  { %373 = vst [vmem:[#allocation1 + $0x3] ss:$4 sm:$0xff] %v354_v22 }
  0x21   :  { %173 = vmatpush.bf16.msra.mxu0 %v722_v19  ;;  %v383_v15 = vld.sshfl [vmem:[#allocation1 + $0x20] sm:$0xff pattern:$0x73625140] }
  0x22   :  { %445 = vmatpush.bf16.msrb.mxu1 %v737_v4 }
  0x25   :  { %174 = vmatpush.bf16.msra.mxu0 %v721_v23 }
  0x27   :  { %v382_v13 = vld.sshfl [vmem:[#allocation1] sm:$0xff pattern:$0x73625140] }
  0x29   :  { %175 = vmatpush.bf16.msra.mxu0 %v720_v24  ;;  %v739_v24 = vld [vmem:[%s1076_s16 + $0x8] sm:$0xff] }
  0x2c   :  { %176 = vmatmul.bf16.vlgmr.msra.gmra.mxu0 %v118_v21 }
  0xa9   :  { %v177_v29 = vpop.f32.mrf.mxu0 }
  0xaa   :  { %v178_v31 = vadd.f32 %v747_v30, %v177_v29 }
  0xac   :  { %v182_v34 = vmax.f32 %v178_v31, 0.0 }
  0xb1   :  { %v179_v32 = vpop.f32.mrf.mxu0 }
  0xb2   :  { %v180_v33 = vadd.f32 %v747_v30, %v179_v32 }
  0xb4   :  { %v183_v35 = vmax.f32 %v180_v33, 0.0  ;;  %v738_v33 = vld [vmem:[%s1076_s16] sm:$0xff] }
  0xb6   :  { %v184_v36 = vpack.c.bf16 %v183_v35, %v182_v34  ;;  %v743_v34 = vld [vmem:[%s1078_s18 + $0x18] sm:$0xff] }
  0xb8   :  { %664 = vmatmul.msk.bf16.vlgmr.msra.gmra.mxu1 %vm221_vm0, %v184_v36  ;;  %v753_v36 = vld [vmem:[%s1075_s15] ss:$0 sm:$0xff] }
 0x135   :  { %v234_v39 = vpop.f32.mrf.mxu1 }
 0x136   :  { %v235_v41 = vadd.f32 %v748_v40, %v234_v39 }
 0x138   :  { %v239_v44 = vmax.f32 %v235_v41, 0.0 }
 0x13d   :  { %v236_v42 = vpop.f32.mrf.mxu1 }
 0x13e   :  { %v237_v43 = vadd.f32 %v748_v40, %v236_v42 }
 0x140   :  { %v240_v45 = vmax.f32 %v237_v43, 0.0  ;;  %v742_v43 = vld [vmem:[%s1078_s18 + $0x10] sm:$0xff] }
 0x142   :  { %v241_v46 = vpack.c.bf16 %v240_v45, %v239_v44  ;;  %v741_v44 = vld [vmem:[%s1078_s18 + $0x8] sm:$0xff]  ;;  %v740_v45 = vld [vmem:[%s1078_s18] sm:$0xff] }
 0x144   :  { %673 = vmatmul.msk.bf16.vlgmr.msra.gmra.mxu2 %vm262_vm1, %v241_v46 }
 0x145   :  { %538 = vmatpush.bf16.msra.mxu2 %v743_v34 }
 0x149   :  { %539 = vmatpush.bf16.msra.mxu2 %v742_v43 }
 0x14d   :  { %540 = vmatpush.bf16.msra.mxu2 %v741_v44 }
 0x151   :  { %541 = vmatpush.bf16.msra.mxu2 %v740_v45 }
 0x1c7   :  { %v275_v49 = vpop.f32.mrf.mxu2 }
 0x1c8   :  { %v276_v51 = vadd.f32 %v749_v50, %v275_v49 }
 0x1ca   :  { %v280_v54 = vmax.f32 %v276_v51, 0.0 }
 0x1cf   :  { %v277_v52 = vpop.f32.mrf.mxu2 }
 0x1d0   :  { %v278_v53 = vadd.f32 %v749_v50, %v277_v52 }
 0x1d2   :  { %v281_v55 = vmax.f32 %v278_v53, 0.0 }
 0x1d4   :  { %v282_v56 = vpack.c.bf16 %v281_v55, %v280_v54  ;;  %v755_v54 = vld [vmem:[%s1079_s19] ss:$0 sm:$0xff] }
 0x1d6   :  { %678 = vmatmul.msk.bf16.vlgmr.msra.gmra.mxu3 %vm295_vm2, %v282_v56 }
 0x1d7   :  { %484 = vmatpush.bf16.msra.mxu3 %v739_v24 }
 0x1db   :  { %485 = vmatpush.bf16.msra.mxu3 %v738_v33 }
 0x1e6   :  { %683 = vmatmul.msk.bf16.vlgmr.msrb.gmra.mxu3 %vm295_vm2, %v282_v56 }
 0x259   :  { %v308_v1 = vpop.f32.mrf.mxu3 }
 0x25a   :  { %v309_v18 = vadd.f32 %v750_v14, %v308_v1 }
 0x261   :  { %v310_v3 = vpop.f32.mrf.mxu3 }
 0x262   :  { %v311_v19 = vadd.f32 %v750_v14, %v310_v3 }
 0x269   :  { %v334_v6 = vpop.f32.mrf.mxu3 }
 0x26a   :  { %v335_v7 = vadd.f32 %v751_v5, %v334_v6 }
 0x26c   :  { %v339_v8 = vmul.f32 1.442695, %v335_v7 }
 0x26e   :  { %756 = vpow2.f32 %v339_v8 }
 0x271   :  { %v336_v9 = vpop.f32.mrf.mxu3 }
 0x272   :  { %v337_v10 = vadd.f32 %v751_v5, %v336_v9 }
 0x274   :  { %v341_v11 = vmul.f32 1.442695, %v337_v10  ;;  %v757_v12 = vpop.eup %756 }
 0x275   :  { %v386_v16 = vmul.f32 %v757_v12, %v382_v13 }
 0x276   :  { %758 = vpow2.f32 %v341_v11 }
 0x277   :  { %v388_v21 = vadd.f32 %v386_v16, %v309_v18 }
 0x27c   :  { %v759_v17 = vpop.eup %758 }
 0x27d   :  { %v387_v20 = vmul.f32 %v759_v17, %v383_v15 }
 0x27f   :  { %v389_v22 = vadd.f32 %v387_v20, %v311_v19 }
 0x281   :  { %v390_v23 = vpack.c.bf16 %v389_v22, %v388_v21 }
 0x283   :  { %688 = vmatmul.msk.bf16.vlgmr.msrb.gmra.mxu2 %vm295_vm2, %v390_v23 }
 0x306   :  { %v415_v25 = vpop.f32.mrf.mxu2 }
 0x307   :  { %v416_v27 = vadd.f32 %v752_v26, %v415_v25 }
 0x309   :  { %v420_v30 = vmax.f32 %v416_v27, 0.0 }
 0x30e   :  { %v417_v28 = vpop.f32.mrf.mxu2 }
 0x30f   :  { %v418_v29 = vadd.f32 %v752_v26, %v417_v28 }
 0x311   :  { %v421_v31 = vmax.f32 %v418_v29, 0.0 }
 0x313   :  { %v422_v32 = vpack.c.bf16 %v421_v31, %v420_v30 }
 0x315   :  { %693 = vmatmul.msk.bf16.vlgmr.msrb.gmra.mxu1 %vm295_vm2, %v422_v32 }
 0x392   :  { %v447_v35 = vpop.f32.mrf.mxu1 }
 0x393   :  { %v448_v37 = vadd.f32 %v753_v36, %v447_v35 }
 0x395   :  { %v452_v40 = vmax.f32 %v448_v37, 0.0 }
 0x39a   :  { %v449_v38 = vpop.f32.mrf.mxu1 }
 0x39b   :  { %v450_v39 = vadd.f32 %v753_v36, %v449_v38 }
 0x39d   :  { %v453_v41 = vmax.f32 %v450_v39, 0.0 }
 0x39f   :  { %v454_v42 = vpack.c.bf16 %v453_v41, %v452_v40 }
 0x3a1   :  { %702 = vmatmul.msk.bf16.vlgmr.msra.gmra.mxu3 %vm262_vm1, %v454_v42 }
 0x424   :  { %v487_v46 = vpop.f32.mrf.mxu3 }
 0x425   :  { %v488_v48 = vadd.f32 %v754_v47, %v487_v46 }
 0x427   :  { %v492_v51 = vmax.f32 %v488_v48, 0.0 }
 0x42c   :  { %v489_v49 = vpop.f32.mrf.mxu3 }
 0x42d   :  { %v490_v50 = vadd.f32 %v754_v47, %v489_v49 }
 0x42f   :  { %v493_v52 = vmax.f32 %v490_v50, 0.0 }
 0x431   :  { %v494_v53 = vpack.c.bf16 %v493_v52, %v492_v51 }
 0x433   :  { %719 = vmatmul.msk.bf16.vlgmr.msra.gmra.mxu2 %vm221_vm0, %v494_v53 }
 0x4b6   :  { %v543_v55 = vpop.f32.mrf.mxu2 }
 0x4b7   :  { %v544_v56 = vadd.f32 %v755_v54, %v543_v55 }
 0x4b9   :  { %v548_v57 = vpack.c.bf16 %v544_v56, %v544_v56 }
 0x4bb   :  { %v552_v58 = vrot.slane %v548_v57, 3 }
 0x4bd   :  { %v557_v59 = vsel %vm554_vm3, %v548_v57, %v552_v58  ;;  %v559_v60 = vsel %vm558_vm4, %v548_v57, %v552_v58  ;;  %v563_v61 = vsel %vm562_vm5, %v548_v57, %v552_v58  ;;  %v567_v62 = vsel %vm566_vm6, %v548_v57, %v552_v58 }
 0x4be   :  { %v561_v63 = vrot.slane %v559_v60, 1  ;;  %v565_v0 = vrot.slane %v563_v61, 2  ;;  %v569_v1 = vrot.slane %v567_v62, 3  ;;  %590 = vst [vmem:[#allocation2] sm:$0x1] %v557_v59  ;;  %v545_v2 = vpop.f32.mrf.mxu2 }
 0x4bf   :  { %v546_v3 = vadd.f32 %v755_v54, %v545_v2 }
 0x4c0   :  { %591 = vst [vmem:[#allocation2 + $0x1] sm:$0x1] %v561_v63 }
 0x4c1   :  { %592 = vst [vmem:[#allocation2 + $0x2] sm:$0x1] %v565_v0  ;;  %v549_v4 = vpack.c.bf16 %v546_v3, %v546_v3 }
 0x4c2   :  { %593 = vst [vmem:[#allocation2 + $0x3] sm:$0x1] %v569_v1 }
 0x4c3   :  { %v553_v5 = vrot.slane %v549_v4, 3 }
 0x4c5   :  { %v572_v6 = vsel %vm554_vm3, %v549_v4, %v553_v5  ;;  %v573_v7 = vsel %vm558_vm4, %v549_v4, %v553_v5  ;;  %v576_v8 = vsel %vm562_vm5, %v549_v4, %v553_v5  ;;  %v579_v9 = vsel %vm566_vm6, %v549_v4, %v553_v5 }
 0x4c6   :  { %v575_v10 = vrot.slane %v573_v7, 1  ;;  %v578_v11 = vrot.slane %v576_v8, 2  ;;  %v581_v12 = vrot.slane %v579_v9, 3  ;;  %594 = vst [vmem:[#allocation2 + $0x4] sm:$0x1] %v572_v6 }
 0x4c8   :  { %595 = vst [vmem:[#allocation2 + $0x5] sm:$0x1] %v575_v10 }
 0x4c9   :  { %596 = vst [vmem:[#allocation2 + $0x6] sm:$0x1] %v578_v11 }
 0x4ca   :  { %597 = vst [vmem:[#allocation2 + $0x7] sm:$0x1] %v581_v12 }
 0x4cb   :  { %601 = vsyncadd [#allocation3], 112  ;;  %s604_s19 = sshll.u32 %s1080_s20, 4  ;;  %s786_s1 = smov [#allocation2]   ;;  %s605_s19 = int_to_ptr.hbm [resolvable:$true] %s604_s19 }
 0x4cc   :  { %s602_s22 = sshll.u32 %s786_s1, 4  ;;  %s787_s24 = smov 16   ;;  %s603_s22 = int_to_ptr.vmem [resolvable:$true] %s602_s22 }
 0x4cd   :  { %s788_s11 = smov 1  }
 0x4ce   :  { %610 = dma.vmem_to_hbm [thread:$0]  %s603_s22, 16, %s605_s19, [#allocation3], %s787_s24, %s787_s24, %s788_s11  }
 0x4cf   :  { %784 = dma.done.wait [#allocation3], 128  }
 0x4d0   :  { %785 = vsyncadd [#allocation3], 4294967168 }
 0x4d1   :  { %615 = vsyncpa [#allocation3], 1 }

</bundles_post_ra>
